<compile_context>
chip_gen: v5e
topology: v5e:2x2
jax: 0.10.0
libtpu: 0.0.40
codegen_flags: <defaults>
</compile_context>

<pallas_src>
import jax
import jax.numpy as jnp
from jax.experimental import pallas as pl
from jax.experimental.pallas import tpu as pltpu


def mlp_kernel(x_ref, w1_ref, b1_ref, w2_ref, b2_ref, o_ref):
    # Cast the f32 input tile to bf16 in-kernel (free VPU work under MXU).
    x_bf = x_ref[...].astype(jnp.bfloat16)
    # Hidden layer: (TM, 512)bf16 @ (512, 256)bf16 -> f32 accumulation on MXU.
    h = jnp.dot(x_bf, w1_ref[...], preferred_element_type=jnp.float32)
    h = h + b1_ref[...]                       # f32 bias add, broadcast (1, 256)
    # LeakyReLU (negative_slope=0.01, PyTorch default), kept in f32.
    h = jnp.maximum(h, 0.01 * h)
    # Output layer: (TM, 256)bf16 @ (256, 128-padded)bf16 -> f32 accumulation.
    out = jnp.dot(h.astype(jnp.bfloat16), w2_ref[...],
                  preferred_element_type=jnp.float32)
    o_ref[...] = out + b2_ref[...]            # lane-dense (TM, 128) f32 store


def mlp_forward(x, w1, b1, w2, b2, *, block_m=512):
    """x: (B, 512) f32; w1: (512, 256); b1: (256,)|(1,256); w2: (256, NC); b2: (NC,)|(1,NC)."""
    B, K = x.shape
    H = w1.shape[1]
    n_classes = w2.shape[1]

    # --- lane-dense padding of the classifier head to a multiple of 128 ---
    n_pad = pl.cdiv(n_classes, 128) * 128
    w2_p = jnp.zeros((H, n_pad), jnp.bfloat16).at[:, :n_classes].set(
        w2.astype(jnp.bfloat16))
    b2_p = jnp.zeros((1, n_pad), jnp.float32).at[:, :n_classes].set(
        jnp.reshape(b2, (1, n_classes)).astype(jnp.float32))

    # --- batch tiling: TM multiple of 8 sublanes ---
    tm = min(block_m, max(8, pl.cdiv(B, 8) * 8))
    Bp = pl.cdiv(B, tm) * tm

    x_f = x.astype(jnp.float32)
    if Bp != B:
        # Zero-pad only the ragged batch remainder (padded rows are discarded).
        x_f = jnp.zeros((Bp, K), jnp.float32).at[:B].set(x_f)
    w1_b = w1.astype(jnp.bfloat16)
    b1_f = jnp.reshape(b1, (1, H)).astype(jnp.float32)

    grid = (Bp // tm,)
    cost = pl.CostEstimate(
        flops=2 * Bp * K * H + 2 * Bp * H * n_pad,
        transcendentals=0,
        bytes_accessed=(x_f.size * 4 + w1_b.size * 2 + w2_p.size * 2
                        + b1_f.size * 4 + b2_p.size * 4 + Bp * n_pad * 4),
    )

    out = pl.pallas_call(
        mlp_kernel,
        out_shape=jax.ShapeDtypeStruct((Bp, n_pad), jnp.float32),
        grid_spec=pltpu.PrefetchScalarGridSpec(
            num_scalar_prefetch=0,
            grid=grid,
            in_specs=[
                pl.BlockSpec((tm, K), lambda i: (i, 0)),       # x tile per step
                pl.BlockSpec((K, H), lambda i: (0, 0)),        # W1 resident
                pl.BlockSpec((1, H), lambda i: (0, 0)),        # b1 resident
                pl.BlockSpec((H, n_pad), lambda i: (0, 0)),    # W2 resident (padded)
                pl.BlockSpec((1, n_pad), lambda i: (0, 0)),    # b2 resident (padded)
            ],
            out_specs=pl.BlockSpec((tm, n_pad), lambda i: (i, 0)),
        ),
        compiler_params=pltpu.CompilerParams(
            dimension_semantics=("parallel",)),
        cost_estimate=cost,
    )(x_f, w1_b, b1_f, w2_p, b2_p)

    return out[:B, :n_classes]


def init_params(key, n_classes):
    # Deterministic synthetic init (PyTorch nn.Linear shapes: 512->256->n_classes).
    k1, k2, k3, k4 = jax.random.split(key, 4)
    lim1 = 1.0 / jnp.sqrt(512.0)
    lim2 = 1.0 / jnp.sqrt(256.0)
    w1 = jax.random.uniform(k1, (512, 256), jnp.float32, -lim1, lim1)
    b1 = jax.random.uniform(k2, (1, 256), jnp.float32, -lim1, lim1)
    w2 = jax.random.uniform(k3, (256, n_classes), jnp.float32, -lim2, lim2)
    b2 = jax.random.uniform(k4, (1, n_classes), jnp.float32, -lim2, lim2)
    return w1, b1, w2, b2


def _reference(x, w1, b1, w2, b2):
    h = x @ w1 + jnp.reshape(b1, (1, -1))
    h = jnp.where(h > 0, h, 0.01 * h)
    return h @ w2 + jnp.reshape(b2, (1, -1))


if __name__ == "__main__":
    n_classes = 10

    key = jax.random.PRNGKey(0)
    kx, kp, kx2 = jax.random.split(key, 3)
    w1, b1, w2, b2 = init_params(kp, n_classes)

    # Small batch (grid of 1, TM=8).
    x = jax.random.normal(kx, (8, 512), jnp.float32)
    out = mlp_forward(x, w1, b1, w2, b2)
    jax.block_until_ready(out)
    ref = _reference(x, w1, b1, w2, b2)
    assert out.shape == (8, n_classes)
    # bf16 matmul operands -> loosened tolerance.
    assert jnp.allclose(out, ref, atol=5e-2, rtol=5e-2), float(
        jnp.max(jnp.abs(out - ref)))

    # Non-multiple batch with a small block_m to exercise grid > 1 + padding.
    x2 = jax.random.normal(kx2, (260, 512), jnp.float32)
    out2 = mlp_forward(x2, w1, b1, w2, b2, block_m=128)
    jax.block_until_ready(out2)
    ref2 = _reference(x2, w1, b1, w2, b2)
    assert out2.shape == (260, n_classes)
    assert jnp.allclose(out2, ref2, atol=5e-2, rtol=5e-2), float(
        jnp.max(jnp.abs(out2 - ref2)))

    print("KERNEL_OK")
</pallas_src>

<mosaic_0001>
module attributes {stable_mosaic.version = 11 : i64} {
  func.func @mlp_kernel(%arg0: i32, %arg1: memref<8x512xf32, #tpu.memory_space<vmem>>, %arg2: memref<512x256xbf16, #tpu.memory_space<vmem>>, %arg3: memref<1x256xf32, #tpu.memory_space<vmem>>, %arg4: memref<256x128xbf16, #tpu.memory_space<vmem>>, %arg5: memref<1x128xf32, #tpu.memory_space<vmem>>, %arg6: memref<8x128xf32, #tpu.memory_space<vmem>>) attributes {dimension_semantics = [#tpu.dimension_semantics<parallel>], iteration_bounds = array<i64: 1>, scalar_prefetch = 0 : i64, scratch_operands = 0 : i64, tpu.core_type = #tpu.core_type<tc>, window_params = [{transform_indices = @transform_0, window_bounds = array<i64: 8, 512>}, {pipeline_mode = #tpu.pipeline_mode<synchronous>, transform_indices = @transform_1, window_bounds = array<i64: 512, 256>}, {pipeline_mode = #tpu.pipeline_mode<synchronous>, transform_indices = @transform_2, window_bounds = array<i64: 1, 256>}, {pipeline_mode = #tpu.pipeline_mode<synchronous>, transform_indices = @transform_3, window_bounds = array<i64: 256, 128>}, {pipeline_mode = #tpu.pipeline_mode<synchronous>, transform_indices = @transform_4, window_bounds = array<i64: 1, 128>}, {transform_indices = @transform_5, window_bounds = array<i64: 8, 128>}]} {
    %c0 = arith.constant 0 : index
    %c0_0 = arith.constant 0 : index
    %0 = vector.load %arg1[%c0, %c0_0] : memref<8x512xf32, #tpu.memory_space<vmem>>, vector<8x512xf32>
    %1 = arith.truncf %0 : vector<8x512xf32> to vector<8x512xbf16>
    %c0_1 = arith.constant 0 : index
    %c0_2 = arith.constant 0 : index
    %2 = vector.load %arg2[%c0_1, %c0_2] : memref<512x256xbf16, #tpu.memory_space<vmem>>, vector<512x256xbf16>
    %cst = arith.constant dense<0.000000e+00> : vector<8x256xf32>
    %3 = tpu.matmul %1, %2, %cst {dimension_numbers = #tpu.dot_dimension_numbers<[1], [0], [0], [1], [0, 0, 1, 1], [], []>} : vector<8x512xbf16>, vector<512x256xbf16>, vector<8x256xf32> -> vector<8x256xf32>
    %c0_3 = arith.constant 0 : index
    %c0_4 = arith.constant 0 : index
    %4 = vector.load %arg3[%c0_3, %c0_4] : memref<1x256xf32, #tpu.memory_space<vmem>>, vector<1x256xf32>
    %5 = vector.broadcast %4 : vector<1x256xf32> to vector<8x256xf32>
    %6 = arith.addf %3, %5 : vector<8x256xf32>
    %cst_5 = arith.constant 0.00999999977 : f32
    %7 = vector.broadcast %cst_5 : f32 to vector<8x256xf32>
    %8 = arith.mulf %7, %6 : vector<8x256xf32>
    %9 = arith.maximumf %6, %8 : vector<8x256xf32>
    %10 = arith.truncf %9 : vector<8x256xf32> to vector<8x256xbf16>
    %c0_6 = arith.constant 0 : index
    %c0_7 = arith.constant 0 : index
    %11 = vector.load %arg4[%c0_6, %c0_7] : memref<256x128xbf16, #tpu.memory_space<vmem>>, vector<256x128xbf16>
    %cst_8 = arith.constant dense<0.000000e+00> : vector<8x128xf32>
    %12 = tpu.matmul %10, %11, %cst_8 {dimension_numbers = #tpu.dot_dimension_numbers<[1], [0], [0], [1], [0, 0, 1, 1], [], []>} : vector<8x256xbf16>, vector<256x128xbf16>, vector<8x128xf32> -> vector<8x128xf32>
    %c0_9 = arith.constant 0 : index
    %c0_10 = arith.constant 0 : index
    %13 = vector.load %arg5[%c0_9, %c0_10] : memref<1x128xf32, #tpu.memory_space<vmem>>, vector<1x128xf32>
    %14 = vector.broadcast %13 : vector<1x128xf32> to vector<8x128xf32>
    %15 = arith.addf %12, %14 : vector<8x128xf32>
    %c0_11 = arith.constant 0 : index
    %c0_12 = arith.constant 0 : index
    %16 = vector.load %arg6[%c0_11, %c0_12] : memref<8x128xf32, #tpu.memory_space<vmem>>, vector<8x128xf32>
    tpu.vector_store %arg6[%c0_11, %c0_12], %15 {strides = array<i32>} : memref<8x128xf32, #tpu.memory_space<vmem>>, vector<8x128xf32>,
    return
  }
  func.func @transform_0(%arg0: i32) -> (i32, i32) {
    %c0_i32 = arith.constant 0 : i32
    %c0_i32_0 = arith.constant 0 : i32
    return %arg0, %c0_i32 : i32, i32
  }
  func.func @transform_1(%arg0: i32) -> (i32, i32) {
    %c0_i32 = arith.constant 0 : i32
    %c0_i32_0 = arith.constant 0 : i32
    %c0_i32_1 = arith.constant 0 : i32
    return %c0_i32, %c0_i32_0 : i32, i32
  }
  func.func @transform_2(%arg0: i32) -> (i32, i32) {
    %c0_i32 = arith.constant 0 : i32
    %c0_i32_0 = arith.constant 0 : i32
    %c0_i32_1 = arith.constant 0 : i32
    return %c0_i32, %c0_i32_0 : i32, i32
  }
  func.func @transform_3(%arg0: i32) -> (i32, i32) {
    %c0_i32 = arith.constant 0 : i32
    %c0_i32_0 = arith.constant 0 : i32
    %c0_i32_1 = arith.constant 0 : i32
    return %c0_i32, %c0_i32_0 : i32, i32
  }
  func.func @transform_4(%arg0: i32) -> (i32, i32) {
    %c0_i32 = arith.constant 0 : i32
    %c0_i32_0 = arith.constant 0 : i32
    %c0_i32_1 = arith.constant 0 : i32
    return %c0_i32, %c0_i32_0 : i32, i32
  }
  func.func @transform_5(%arg0: i32) -> (i32, i32) {
    %c0_i32 = arith.constant 0 : i32
    %c0_i32_0 = arith.constant 0 : i32
    return %arg0, %c0_i32 : i32, i32
  }
}

</mosaic_0001>

<bundles_post_ra>
// kernel: tpu_custom_call.1
= control target key start
LH: loop header
LB: loop body
LE: loop exit
PB: predicated region body
PF: predicated region fallthrough
CT: control target
= control target key end

     0   :  { %10 = vsyncpa [#allocation3], 0  ;;  %s1377_s0 = inlined_call_operand.hbm [shape: f32[8,512], index: 0, kind: input, shape index: {}]   ;;  %s1378_s1 = inlined_call_operand.hbm [shape: bf16[512,256], index: 1, kind: input, shape index: {}]   ;;  %s1379_s2 = inlined_call_operand.hbm [shape: f32[1,256], index: 2, kind: input, shape index: {}]   ;;  %s1380_s3 = inlined_call_operand.hbm [shape: bf16[256,128], index: 3, kind: input, shape index: {}]   ;;  %s1381_s4 = inlined_call_operand.vmem [shape: f32[1,128], index: 4, kind: input, shape index: {}]   ;;  %s1382_s5 = inlined_call_operand.hbm [shape: f32[8,128], index: 5, kind: output, shape index: {}]  }
   0x1   :  { %11 = vsyncpa [#allocation6], 0 }
   0x2   :  { %12 = vsyncpa [#allocation9], 0  ;;  %s29_s20 = sshll.u32 %s1378_s1, 4  ;;  %s30_s20 = int_to_ptr.hbm [resolvable:$true] %s29_s20 }
   0x3   :  { %13 = vsyncpa [#allocation4], 0  ;;  %s1304_s21 = smov [#allocation5]   ;;  %s19_s25 = sshll.u32 %s1377_s0, 4  ;;  %s20_s25 = int_to_ptr.hbm [resolvable:$true] %s19_s25 }
   0x4   :  { %s31_s22 = sshll.u32 %s1304_s21, 4  ;;  %s1305_s26 = smov 128   ;;  %s32_s22 = int_to_ptr.vmem [resolvable:$true] %s31_s22 }
   0x5   :  { %s1306_s27 = smov 8   ;;  %s1307_s28 = smov [#allocation2]  }
   0x6   :  { %37 = dma.hbm_to_vmem [thread:$0]  %s30_s20, 8192, %s32_s22, [#allocation6], %s1305_s26, %s1305_s26, %s1306_s27  }
   0x7   :  { %s21_s29 = sshll.u32 %s1307_s28, 4  ;;  %s43_s7 = sshll.u32 %s1379_s2, 4  ;;  %s22_s29 = int_to_ptr.vmem [resolvable:$true] %s21_s29  ;;  %s44_s7 = int_to_ptr.hbm [resolvable:$true] %s43_s7 }
   0x8   :  { %24 = dma.hbm_to_vmem [thread:$0]  %s20_s25, 512, %s22_s29, [#allocation3]  }
   0x9   :  { %s53_s9 = sshll.u32 %s1380_s3, 4  ;;  %s1308_s10 = smov [#allocation7]   ;;  %s54_s9 = int_to_ptr.hbm [resolvable:$true] %s53_s9 }
   0xa   :  { %s45_s11 = sshll.u32 %s1308_s10, 4  ;;  %s1309_s0 = smov [#allocation8]   ;;  %s46_s11 = int_to_ptr.vmem [resolvable:$true] %s45_s11 }
   0xb   :  { %48 = dma.hbm_to_vmem [thread:$0]  %s44_s7, 32, %s46_s11, [#allocation6]  }
   0xc   :  { %s55_s12 = sshll.u32 %s1309_s0, 4  ;;  %s1310_s13 = smov 64   ;;  %s56_s12 = int_to_ptr.vmem [resolvable:$true] %s55_s12 }
   0xd   :  { %s1311_s14 = smov 4  }
   0xe   :  { %61 = dma.hbm_to_vmem [thread:$0]  %s54_s9, 2048, %s56_s12, [#allocation9], %s1310_s13, %s1310_s13, %s1311_s14  }
   0xf   :  { %1296 = dma.done.wait [#allocation3], 512  }
  0x10   :  { %1297 = vsyncadd [#allocation3], 4294966784 }
  0x11   :  { %1298 = dma.done.wait [#allocation6], 8224  }
  0x12   :  { %1299 = vsyncadd [#allocation6], 4294959072 }
  0x13   :  { %1300 = dma.done.wait [#allocation9], 2048  }
  0x14   :  { %1301 = vsyncadd [#allocation9], 4294965248  ;;  %v824_v0 = vld [vmem:[#allocation5 + $0x70] sm:$0xf]  ;;  %v1101_v1 = vld [vmem:[#allocation5 + $0x74] sm:$0xf0] }
  0x15   :  { %v888_v2 = vld [vmem:[#allocation5 + $0xf0] sm:$0xf]  ;;  %v825_v3 = vor.u32 %v1101_v1, %v824_v0  ;;  %v1117_v4 = vld [vmem:[#allocation5 + $0xf4] sm:$0xf0]  ;;  %v816_v11 = vld [vmem:[#allocation5 + $0x60] sm:$0xf] }
  0x16   :  { %v952_v5 = vld [vmem:[#allocation5 + $0x170] sm:$0xf]  ;;  %v1133_v6 = vld [vmem:[#allocation5 + $0x174] sm:$0xf0]  ;;  %v889_v7 = vor.u32 %v1117_v4, %v888_v2  ;;  %v1099_v13 = vld [vmem:[#allocation5 + $0x64] sm:$0xf0] }
  0x17   :  { %v953_v8 = vor.u32 %v1133_v6, %v952_v5  ;;  %v1016_v9 = vld [vmem:[#allocation5 + $0x1f0] sm:$0xf]  ;;  %v1149_v10 = vld [vmem:[#allocation5 + $0x1f4] sm:$0xf0]  ;;  %478 = vmatpush.bf16.msra.mxu0 %v825_v3  ;;  %v880_v14 = vld [vmem:[#allocation5 + $0xe0] sm:$0xf]  ;;  %v817_v16 = vor.u32 %v1099_v13, %v816_v11 }
  0x18   :  { %v1017_v12 = vor.u32 %v1149_v10, %v1016_v9  ;;  %v1115_v15 = vld [vmem:[#allocation5 + $0xe4] sm:$0xf0]  ;;  %491 = vmatpush.bf16.msra.mxu1 %v889_v7  ;;  %v944_v18 = vld [vmem:[#allocation5 + $0x160] sm:$0xf]  ;;  %v808_v23 = vld [vmem:[#allocation5 + $0x50] sm:$0xf] }
  0x19   :  { %504 = vmatpush.bf16.msra.mxu2 %v953_v8  ;;  %v881_v17 = vor.u32 %v1115_v15, %v880_v14  ;;  %v1131_v19 = vld [vmem:[#allocation5 + $0x164] sm:$0xf0]  ;;  %v1008_v20 = vld [vmem:[#allocation5 + $0x1e0] sm:$0xf]  ;;  %v1097_v24 = vld [vmem:[#allocation5 + $0x54] sm:$0xf0] }
  0x1a   :  { %517 = vmatpush.bf16.msra.mxu3 %v1017_v12  ;;  %v945_v21 = vor.u32 %v1131_v19, %v944_v18  ;;  %v1147_v22 = vld [vmem:[#allocation5 + $0x1e4] sm:$0xf0]  ;;  %v872_v26 = vld [vmem:[#allocation5 + $0xd0] sm:$0xf]  ;;  %v1113_v27 = vld [vmem:[#allocation5 + $0xd4] sm:$0xf0]  ;;  %v809_v29 = vor.u32 %v1097_v24, %v808_v23 }
  0x1b   :  { %v1009_v25 = vor.u32 %v1147_v22, %v1008_v20  ;;  %v936_v28 = vld [vmem:[#allocation5 + $0x150] sm:$0xf]  ;;  %479 = vmatpush.bf16.msra.mxu0 %v817_v16  ;;  %v1129_v30 = vld [vmem:[#allocation5 + $0x154] sm:$0xf0]  ;;  %v873_v33 = vor.u32 %v1113_v27, %v872_v26  ;;  %v800_v35 = vld [vmem:[#allocation5 + $0x40] sm:$0xf] }
  0x1c   :  { %v1000_v31 = vld [vmem:[#allocation5 + $0x1d0] sm:$0xf]  ;;  %v1145_v32 = vld [vmem:[#allocation5 + $0x1d4] sm:$0xf0]  ;;  %492 = vmatpush.bf16.msra.mxu1 %v881_v17  ;;  %v937_v34 = vor.u32 %v1129_v30, %v936_v28  ;;  %v1095_v36 = vld [vmem:[#allocation5 + $0x44] sm:$0xf0] }
  0x1d   :  { %505 = vmatpush.bf16.msra.mxu2 %v945_v21  ;;  %v864_v37 = vld [vmem:[#allocation5 + $0xc0] sm:$0xf]  ;;  %v1001_v38 = vor.u32 %v1145_v32, %v1000_v31  ;;  %v1111_v39 = vld [vmem:[#allocation5 + $0xc4] sm:$0xf0]  ;;  %v801_v44 = vor.u32 %v1095_v36, %v800_v35  ;;  %v792_v47 = vld [vmem:[#allocation5 + $0x30] sm:$0xf] }
  0x1e   :  { %518 = vmatpush.bf16.msra.mxu3 %v1009_v25  ;;  %v928_v40 = vld [vmem:[#allocation5 + $0x140] sm:$0xf]  ;;  %v1127_v41 = vld [vmem:[#allocation5 + $0x144] sm:$0xf0]  ;;  %v865_v45 = vor.u32 %v1111_v39, %v864_v37  ;;  %v1093_v48 = vld [vmem:[#allocation5 + $0x34] sm:$0xf0] }
  0x1f   :  { %v992_v42 = vld [vmem:[#allocation5 + $0x1c0] sm:$0xf]  ;;  %v1143_v43 = vld [vmem:[#allocation5 + $0x1c4] sm:$0xf0]  ;;  %480 = vmatpush.bf16.msra.mxu0 %v809_v29  ;;  %v929_v46 = vor.u32 %v1127_v41, %v928_v40  ;;  %v856_v49 = vld [vmem:[#allocation5 + $0xb0] sm:$0xf]  ;;  %v793_v56 = vor.u32 %v1093_v48, %v792_v47 }
  0x20   :  { %493 = vmatpush.bf16.msra.mxu1 %v873_v33  ;;  %v993_v50 = vor.u32 %v1143_v43, %v992_v42  ;;  %v1109_v51 = vld [vmem:[#allocation5 + $0xb4] sm:$0xf0]  ;;  %v920_v52 = vld [vmem:[#allocation5 + $0x130] sm:$0xf]  ;;  %v784_v59 = vld [vmem:[#allocation5 + $0x20] sm:$0xf] }
  0x21   :  { %506 = vmatpush.bf16.msra.mxu2 %v937_v34  ;;  %v1125_v53 = vld [vmem:[#allocation5 + $0x134] sm:$0xf0]  ;;  %v984_v54 = vld [vmem:[#allocation5 + $0x1b0] sm:$0xf]  ;;  %v857_v57 = vor.u32 %v1109_v51, %v856_v49  ;;  %v1091_v60 = vld [vmem:[#allocation5 + $0x24] sm:$0xf0] }
  0x22   :  { %519 = vmatpush.bf16.msra.mxu3 %v1001_v38  ;;  %v1141_v55 = vld [vmem:[#allocation5 + $0x1b4] sm:$0xf0]  ;;  %v921_v58 = vor.u32 %v1125_v53, %v920_v52  ;;  %v848_v61 = vld [vmem:[#allocation5 + $0xa0] sm:$0xf]  ;;  %v1107_v63 = vld [vmem:[#allocation5 + $0xa4] sm:$0xf0]  ;;  %v785_v4 = vor.u32 %v1091_v60, %v784_v59 }
  0x23   :  { %481 = vmatpush.bf16.msra.mxu0 %v801_v44  ;;  %v985_v62 = vor.u32 %v1141_v55, %v984_v54  ;;  %v912_v0 = vld [vmem:[#allocation5 + $0x120] sm:$0xf]  ;;  %v1123_v1 = vld [vmem:[#allocation5 + $0x124] sm:$0xf0]  ;;  %v849_v5 = vor.u32 %v1107_v63, %v848_v61  ;;  %v776_v7 = vld [vmem:[#allocation5 + $0x10] sm:$0xf] }
  0x24   :  { %494 = vmatpush.bf16.msra.mxu1 %v865_v45  ;;  %v976_v2 = vld [vmem:[#allocation5 + $0x1a0] sm:$0xf]  ;;  %v1139_v3 = vld [vmem:[#allocation5 + $0x1a4] sm:$0xf0]  ;;  %v913_v6 = vor.u32 %v1123_v1, %v912_v0  ;;  %v1089_v8 = vld [vmem:[#allocation5 + $0x14] sm:$0xf0] }
  0x25   :  { %507 = vmatpush.bf16.msra.mxu2 %v929_v46  ;;  %v840_v9 = vld [vmem:[#allocation5 + $0x90] sm:$0xf]  ;;  %v977_v10 = vor.u32 %v1139_v3, %v976_v2  ;;  %v1105_v11 = vld [vmem:[#allocation5 + $0x94] sm:$0xf0]  ;;  %v777_v16 = vor.u32 %v1089_v8, %v776_v7  ;;  %v768_v17 = vld [vmem:[#allocation5] sm:$0xf] }
  0x26   :  { %520 = vmatpush.bf16.msra.mxu3 %v993_v50  ;;  %v904_v12 = vld [vmem:[#allocation5 + $0x110] sm:$0xf]  ;;  %v1121_v13 = vld [vmem:[#allocation5 + $0x114] sm:$0xf0]  ;;  %v1087_v18 = vld [vmem:[#allocation5 + $0x4] sm:$0xf0]  ;;  %v841_v19 = vor.u32 %v1105_v11, %v840_v9 }
  0x27   :  { %482 = vmatpush.bf16.msra.mxu0 %v793_v56  ;;  %v968_v14 = vld [vmem:[#allocation5 + $0x190] sm:$0xf]  ;;  %v1137_v15 = vld [vmem:[#allocation5 + $0x194] sm:$0xf0]  ;;  %v905_v20 = vor.u32 %v1121_v13, %v904_v12  ;;  %v832_v21 = vld [vmem:[#allocation5 + $0x80] sm:$0xf]  ;;  %v769_v31 = vor.u32 %v1087_v18, %v768_v17 }
  0x28   :  { %495 = vmatpush.bf16.msra.mxu1 %v857_v57  ;;  %v1103_v22 = vld [vmem:[#allocation5 + $0x84] sm:$0xf0]  ;;  %v896_v23 = vld [vmem:[#allocation5 + $0x100] sm:$0xf]  ;;  %v969_v24 = vor.u32 %v1137_v15, %v968_v14  ;;  %v1100_v28 = vld [vmem:[#allocation5 + $0x74] sm:$0xf] }
  0x29   :  { %508 = vmatpush.bf16.msra.mxu2 %v921_v58  ;;  %v1119_v25 = vld [vmem:[#allocation5 + $0x104] sm:$0xf0]  ;;  %v960_v26 = vld [vmem:[#allocation5 + $0x180] sm:$0xf]  ;;  %v826_v29 = vld [vmem:[#allocation5 + $0x78] sm:$0xf0]  ;;  %v833_v35 = vor.u32 %v1103_v22, %v832_v21 }
  0x2a   :  { %521 = vmatpush.bf16.msra.mxu3 %v985_v62  ;;  %v1135_v27 = vld [vmem:[#allocation5 + $0x184] sm:$0xf0]  ;;  %v1116_v30 = vld [vmem:[#allocation5 + $0xf4] sm:$0xf]  ;;  %v890_v32 = vld [vmem:[#allocation5 + $0xf8] sm:$0xf0]  ;;  %v897_v36 = vor.u32 %v1119_v25, %v896_v23  ;;  %v829_v41 = vor.u32 %v1100_v28, %v826_v29 }
  0x2b   :  { %483 = vmatpush.bf16.msra.mxu0 %v785_v4  ;;  %v1132_v33 = vld [vmem:[#allocation5 + $0x174] sm:$0xf]  ;;  %v954_v34 = vld [vmem:[#allocation5 + $0x178] sm:$0xf0]  ;;  %v961_v40 = vor.u32 %v1135_v27, %v960_v26  ;;  %v1098_v42 = vld [vmem:[#allocation5 + $0x64] sm:$0xf]  ;;  %v893_v45 = vor.u32 %v1116_v30, %v890_v32 }
  0x2c   :  { %496 = vmatpush.bf16.msra.mxu1 %v849_v5  ;;  %v1148_v37 = vld [vmem:[#allocation5 + $0x1f4] sm:$0xf]  ;;  %v1018_v38 = vld [vmem:[#allocation5 + $0x1f8] sm:$0xf0]  ;;  %v80_v43 = vld [vmem:[#allocation2] sm:$0xff]  ;;  %v957_v46 = vor.u32 %v1132_v33, %v954_v34  ;;  %s1312_s15 = smov [#allocation10]  }
  0x2d   :  { %509 = vmatpush.bf16.msra.mxu2 %v913_v6  ;;  %v82_v39 = vld [vmem:[#allocation2 + $0x10] sm:$0xff]  ;;  %v83_v44 = vld [vmem:[#allocation2 + $0x18] sm:$0xff]  ;;  %v818_v47 = vld [vmem:[#allocation5 + $0x68] sm:$0xf0]  ;;  %v1021_v50 = vor.u32 %v1148_v37, %v1018_v38  ;;  %v1357_v57 = vpack.c.bf16 %v80_v43, %v80_v43  ;;  %s752_s16 = sshll.u32 %s1312_s15, 4  ;;  %s754_s19 = sshll.u32 %s1382_s5, 4  ;;  %s753_s16 = int_to_ptr.vmem [resolvable:$true] %s752_s16  ;;  %s755_s19 = int_to_ptr.hbm [resolvable:$true] %s754_s19 }
  0x2e   :  { %522 = vmatpush.bf16.msra.mxu3 %v977_v10  ;;  %v1114_v48 = vld [vmem:[#allocation5 + $0xe4] sm:$0xf]  ;;  %v81_v49 = vld [vmem:[#allocation2 + $0x8] sm:$0xff]  ;;  %v1355_v54 = vpack.c.bf16 %v82_v39, %v82_v39  ;;  %v1359_v58 = vpack.c.bf16 %v83_v44, %v83_v44  ;;  %v821_v59 = vor.u32 %v1098_v42, %v818_v47  ;;  %v1096_v63 = vld [vmem:[#allocation5 + $0x54] sm:$0xf] }
  0x2f   :  { %484 = vmatpush.bf16.msra.mxu0 %v777_v16  ;;  %v882_v51 = vld [vmem:[#allocation5 + $0xe8] sm:$0xf0]  ;;  %v1130_v52 = vld [vmem:[#allocation5 + $0x164] sm:$0xf]  ;;  %v1361_v60 = vpack.c.bf16 %v81_v49, %v81_v49  ;;  %v810_v0 = vld [vmem:[#allocation5 + $0x58] sm:$0xf0] }
  0x30   :  { %497 = vmatpush.bf16.msra.mxu1 %v841_v19  ;;  %v946_v53 = vld [vmem:[#allocation5 + $0x168] sm:$0xf0]  ;;  %v1146_v55 = vld [vmem:[#allocation5 + $0x1e4] sm:$0xf]  ;;  %v885_v61 = vor.u32 %v1114_v48, %v882_v51  ;;  %v1112_v1 = vld [vmem:[#allocation5 + $0xd4] sm:$0xf]  ;;  %v813_v8 = vor.u32 %v1096_v63, %v810_v0 }
  0x31   :  { %510 = vmatpush.bf16.msra.mxu2 %v905_v20  ;;  %v1010_v56 = vld [vmem:[#allocation5 + $0x1e8] sm:$0xf0]  ;;  %v949_v62 = vor.u32 %v1130_v52, %v946_v53  ;;  %v874_v3 = vld [vmem:[#allocation5 + $0xd8] sm:$0xf0]  ;;  %v1128_v4 = vld [vmem:[#allocation5 + $0x154] sm:$0xf] }
  0x32   :  { %523 = vmatpush.bf16.msra.mxu3 %v969_v24  ;;  %v1013_v2 = vor.u32 %v1146_v55, %v1010_v56  ;;  %v938_v5 = vld [vmem:[#allocation5 + $0x158] sm:$0xf0]  ;;  %v1144_v6 = vld [vmem:[#allocation5 + $0x1d4] sm:$0xf]  ;;  %v877_v9 = vor.u32 %v1112_v1, %v874_v3  ;;  %v1094_v11 = vld [vmem:[#allocation5 + $0x44] sm:$0xf] }
  0x33   :  { %485 = vmatpush.bf16.msra.mxu0 %v769_v31  ;;  %v1002_v7 = vld [vmem:[#allocation5 + $0x1d8] sm:$0xf0]  ;;  %v941_v10 = vor.u32 %v1128_v4, %v938_v5  ;;  %v802_v12 = vld [vmem:[#allocation5 + $0x48] sm:$0xf0]  ;;  %v1110_v13 = vld [vmem:[#allocation5 + $0xc4] sm:$0xf] }
  0x34   :  { %498 = vmatpush.bf16.msra.mxu1 %v833_v35  ;;  %v1005_v14 = vor.u32 %v1144_v6, %v1002_v7  ;;  %v866_v15 = vld [vmem:[#allocation5 + $0xc8] sm:$0xf0]  ;;  %v1126_v16 = vld [vmem:[#allocation5 + $0x144] sm:$0xf]  ;;  %v805_v20 = vor.u32 %v1094_v11, %v802_v12  ;;  %v1092_v23 = vld [vmem:[#allocation5 + $0x34] sm:$0xf] }
  0x35   :  { %511 = vmatpush.bf16.msra.mxu2 %v897_v36  ;;  %v930_v17 = vld [vmem:[#allocation5 + $0x148] sm:$0xf0]  ;;  %v1142_v18 = vld [vmem:[#allocation5 + $0x1c4] sm:$0xf]  ;;  %v869_v21 = vor.u32 %v1110_v13, %v866_v15  ;;  %v794_v24 = vld [vmem:[#allocation5 + $0x38] sm:$0xf0] }
  0x36   :  { %524 = vmatpush.bf16.msra.mxu3 %v961_v40  ;;  %486 = vmatmul.bf16.vlgmr.msra.gmra.mxu0 %v1357_v57  ;;  %v994_v19 = vld [vmem:[#allocation5 + $0x1c8] sm:$0xf0]  ;;  %v933_v22 = vor.u32 %v1126_v16, %v930_v17  ;;  %v1108_v25 = vld [vmem:[#allocation5 + $0xb4] sm:$0xf]  ;;  %v858_v27 = vld [vmem:[#allocation5 + $0xb8] sm:$0xf0]  ;;  %v797_v32 = vor.u32 %v1092_v23, %v794_v24 }
  0x37   :  { %530 = vmatpush.bf16.msrb.mxu0 %v829_v41  ;;  %499 = vmatmul.bf16.vlgmr.msra.gmra.mxu1 %v1361_v60  ;;  %v997_v26 = vor.u32 %v1142_v18, %v994_v19  ;;  %v1124_v28 = vld [vmem:[#allocation5 + $0x134] sm:$0xf]  ;;  %v922_v29 = vld [vmem:[#allocation5 + $0x138] sm:$0xf0]  ;;  %v861_v33 = vor.u32 %v1108_v25, %v858_v27  ;;  %v1090_v35 = vld [vmem:[#allocation5 + $0x24] sm:$0xf] }
  0x38   :  { %543 = vmatpush.bf16.msrb.mxu1 %v893_v45  ;;  %512 = vmatmul.bf16.vlgmr.msra.gmra.mxu2 %v1355_v54  ;;  %v1140_v30 = vld [vmem:[#allocation5 + $0x1b4] sm:$0xf]  ;;  %v986_v31 = vld [vmem:[#allocation5 + $0x1b8] sm:$0xf0]  ;;  %v925_v34 = vor.u32 %v1124_v28, %v922_v29  ;;  %v786_v36 = vld [vmem:[#allocation5 + $0x28] sm:$0xf0] }
  0x39   :  { %556 = vmatpush.bf16.msrb.mxu2 %v957_v46  ;;  %525 = vmatmul.bf16.vlgmr.msra.gmra.mxu3 %v1359_v58  ;;  %v1106_v37 = vld [vmem:[#allocation5 + $0xa4] sm:$0xf]  ;;  %v989_v38 = vor.u32 %v1140_v30, %v986_v31  ;;  %v850_v39 = vld [vmem:[#allocation5 + $0xa8] sm:$0xf0]  ;;  %v789_v44 = vor.u32 %v1090_v35, %v786_v36  ;;  %v1088_v47 = vld [vmem:[#allocation5 + $0x14] sm:$0xf] }
  0x3a   :  { %569 = vmatpush.bf16.msrb.mxu3 %v1021_v50  ;;  %v1122_v40 = vld [vmem:[#allocation5 + $0x124] sm:$0xf]  ;;  %v914_v41 = vld [vmem:[#allocation5 + $0x128] sm:$0xf0]  ;;  %v853_v45 = vor.u32 %v1106_v37, %v850_v39  ;;  %v778_v48 = vld [vmem:[#allocation5 + $0x18] sm:$0xf0] }
  0x3b   :  { %531 = vmatpush.bf16.msrb.mxu0 %v821_v59  ;;  %v1138_v42 = vld [vmem:[#allocation5 + $0x1a4] sm:$0xf]  ;;  %v978_v43 = vld [vmem:[#allocation5 + $0x1a8] sm:$0xf0]  ;;  %v917_v46 = vor.u32 %v1122_v40, %v914_v41  ;;  %v1104_v49 = vld [vmem:[#allocation5 + $0x94] sm:$0xf]  ;;  %v781_v59 = vor.u32 %v1088_v47, %v778_v48 }
  0x3c   :  { %544 = vmatpush.bf16.msrb.mxu1 %v885_v61  ;;  %v981_v50 = vor.u32 %v1138_v42, %v978_v43  ;;  %v842_v51 = vld [vmem:[#allocation5 + $0x98] sm:$0xf0]  ;;  %v1120_v52 = vld [vmem:[#allocation5 + $0x114] sm:$0xf]  ;;  %v1086_v63 = vld [vmem:[#allocation5 + $0x4] sm:$0xf] }
  0x3d   :  { %557 = vmatpush.bf16.msrb.mxu2 %v949_v62  ;;  %v906_v53 = vld [vmem:[#allocation5 + $0x118] sm:$0xf0]  ;;  %v1136_v55 = vld [vmem:[#allocation5 + $0x194] sm:$0xf]  ;;  %v845_v61 = vor.u32 %v1104_v49, %v842_v51  ;;  %v770_v0 = vld [vmem:[#allocation5 + $0x8] sm:$0xf0] }
  0x3e   :  { %570 = vmatpush.bf16.msrb.mxu3 %v1013_v2  ;;  %v970_v56 = vld [vmem:[#allocation5 + $0x198] sm:$0xf0]  ;;  %v909_v62 = vor.u32 %v1120_v52, %v906_v53  ;;  %v1102_v1 = vld [vmem:[#allocation5 + $0x84] sm:$0xf]  ;;  %v834_v3 = vld [vmem:[#allocation5 + $0x88] sm:$0xf0] }
  0x3f   :  { %532 = vmatpush.bf16.msrb.mxu0 %v813_v8  ;;  %v973_v2 = vor.u32 %v1136_v55, %v970_v56  ;;  %v1118_v4 = vld [vmem:[#allocation5 + $0x104] sm:$0xf]  ;;  %v898_v5 = vld [vmem:[#allocation5 + $0x108] sm:$0xf0]  ;;  %v773_v8 = vor.u32 %v1086_v63, %v770_v0  ;;  %v1157_v12 = vld [vmem:[#allocation8 + $0x38] sm:$0xff] }
  0x40   :  { %545 = vmatpush.bf16.msrb.mxu1 %v877_v9  ;;  %v1134_v6 = vld [vmem:[#allocation5 + $0x184] sm:$0xf]  ;;  %v962_v7 = vld [vmem:[#allocation5 + $0x188] sm:$0xf0]  ;;  %v837_v9 = vor.u32 %v1102_v1, %v834_v3  ;;  %v1156_v13 = vld [vmem:[#allocation8 + $0x30] sm:$0xff] }
  0x41   :  { %558 = vmatpush.bf16.msrb.mxu2 %v941_v10  ;;  %v901_v10 = vor.u32 %v1118_v4, %v898_v5  ;;  %v965_v11 = vor.u32 %v1134_v6, %v962_v7  ;;  %v1154_v15 = vld [vmem:[#allocation8 + $0x20] sm:$0xff]  ;;  %v1153_v16 = vld [vmem:[#allocation8 + $0x18] sm:$0xff]  ;;  %v1152_v17 = vld [vmem:[#allocation8 + $0x10] sm:$0xff] }
  0x42   :  { %571 = vmatpush.bf16.msrb.mxu3 %v1005_v14  ;;  %v1155_v14 = vld [vmem:[#allocation8 + $0x28] sm:$0xff]  ;;  %v1165_v19 = vld [vmem:[#allocation8 + $0x78] sm:$0xff]  ;;  %v1158_v36 = vld [vmem:[#allocation8 + $0x40] sm:$0xff] }
  0x43   :  { %533 = vmatpush.bf16.msrb.mxu0 %v805_v20  ;;  %v1151_v18 = vld [vmem:[#allocation8 + $0x8] sm:$0xff]  ;;  %v1150_v20 = vld [vmem:[#allocation8] sm:$0xff]  ;;  %v1175_v63 = vld [vmem:[%s1381_s4] ss:$0 sm:$0xff] }
  0x44   :  { %546 = vmatpush.bf16.msrb.mxu1 %v869_v21  ;;  %v1159_v31 = vld [vmem:[#allocation8 + $0x48] sm:$0xff] }
  0x45   :  { %559 = vmatpush.bf16.msrb.mxu2 %v933_v22  ;;  %v1161_v22 = vld [vmem:[#allocation8 + $0x58] sm:$0xff] }
  0x46   :  { %572 = vmatpush.bf16.msrb.mxu3 %v997_v26  ;;  %v1160_v26 = vld [vmem:[#allocation8 + $0x50] sm:$0xff] }
  0x47   :  { %534 = vmatpush.bf16.msrb.mxu0 %v797_v32 }
  0x48   :  { %547 = vmatpush.bf16.msrb.mxu1 %v861_v33 }
  0x49   :  { %560 = vmatpush.bf16.msrb.mxu2 %v925_v34 }
  0x4a   :  { %573 = vmatpush.bf16.msrb.mxu3 %v989_v38 }
  0x4b   :  { %535 = vmatpush.bf16.msrb.mxu0 %v789_v44 }
  0x4c   :  { %548 = vmatpush.bf16.msrb.mxu1 %v853_v45 }
  0x4d   :  { %561 = vmatpush.bf16.msrb.mxu2 %v917_v46 }
  0x4e   :  { %574 = vmatpush.bf16.msrb.mxu3 %v981_v50 }
  0x4f   :  { %536 = vmatpush.bf16.msrb.mxu0 %v781_v59 }
  0x50   :  { %549 = vmatpush.bf16.msrb.mxu1 %v845_v61 }
  0x51   :  { %562 = vmatpush.bf16.msrb.mxu2 %v909_v62 }
  0x52   :  { %575 = vmatpush.bf16.msrb.mxu3 %v973_v2 }
  0x53   :  { %537 = vmatpush.bf16.msrb.mxu0 %v773_v8 }
  0x54   :  { %550 = vmatpush.bf16.msrb.mxu1 %v837_v9 }
  0x55   :  { %563 = vmatpush.bf16.msrb.mxu2 %v901_v10 }
  0x56   :  { %576 = vmatpush.bf16.msrb.mxu3 %v965_v11  ;;  %538 = vmatmul.bf16.vlgmr.msrb.gmra.mxu0 %v1357_v57  ;;  %v1164_v57 = vld [vmem:[#allocation8 + $0x70] sm:$0xff] }
  0x57   :  { %720 = vmatpush.bf16.msra.mxu0 %v1157_v12  ;;  %551 = vmatmul.bf16.vlgmr.msrb.gmra.mxu1 %v1361_v60  ;;  %v152_v60 = vld [vmem:[#allocation7] sm:$0x3] }
  0x58   :  { %564 = vmatmul.bf16.vlgmr.msrb.gmra.mxu2 %v1355_v54  ;;  %733 = vmatpush.bf16.msra.mxu1 %v1165_v19  ;;  %v1163_v54 = vld [vmem:[#allocation8 + $0x68] sm:$0xff]  ;;  %v154_v21 = vperm.slane %v152_v60, 0  ;;  %v155_v41 = vperm.slane %v152_v60, 1 }
  0x59   :  { %577 = vmatmul.bf16.vlgmr.msrb.gmra.mxu3 %v1359_v58  ;;  %v1162_v58 = vld [vmem:[#allocation8 + $0x60] sm:$0xff] }
  0x5b   :  { %721 = vmatpush.bf16.msra.mxu0 %v1156_v13 }
  0x5c   :  { %734 = vmatpush.bf16.msra.mxu1 %v1164_v57 }
  0x5f   :  { %722 = vmatpush.bf16.msra.mxu0 %v1155_v14 }
  0x60   :  { %735 = vmatpush.bf16.msra.mxu1 %v1163_v54 }
  0x63   :  { %723 = vmatpush.bf16.msra.mxu0 %v1154_v15 }
  0x64   :  { %736 = vmatpush.bf16.msra.mxu1 %v1162_v58 }
  0x67   :  { %724 = vmatpush.bf16.msra.mxu0 %v1153_v16 }
  0x68   :  { %737 = vmatpush.bf16.msra.mxu1 %v1161_v22 }
  0x6b   :  { %725 = vmatpush.bf16.msra.mxu0 %v1152_v17 }
  0x6c   :  { %738 = vmatpush.bf16.msra.mxu1 %v1160_v26 }
  0x6f   :  { %726 = vmatpush.bf16.msra.mxu0 %v1151_v18 }
  0x70   :  { %739 = vmatpush.bf16.msra.mxu1 %v1159_v31 }
  0x73   :  { %727 = vmatpush.bf16.msra.mxu0 %v1150_v20 }
  0x74   :  { %740 = vmatpush.bf16.msra.mxu1 %v1158_v36 }
  0xb3   :  { %v487_v23 = vpop.f32.mrf.mxu0 }
  0xb4   :  { %v488_v24 = vadd.f32 %v487_v23, %v154_v21  ;;  %v500_v25 = vpop.f32.mrf.mxu1 }
  0xb6   :  { %v501_v27 = vadd.f32 %v500_v25, %v488_v24 }
  0xbb   :  { %v513_v28 = vpop.f32.mrf.mxu2  ;;  %v489_v33 = vpop.f32.mrf.mxu0 }
  0xbc   :  { %v514_v29 = vadd.f32 %v513_v28, %v501_v27  ;;  %v526_v30 = vpop.f32.mrf.mxu3  ;;  %v502_v34 = vpop.f32.mrf.mxu1 }
  0xbe   :  { %v527_v32 = vadd.f32 %v526_v30, %v514_v29 }
  0xc0   :  { %v582_v35 = vmul.f32 0.01, %v527_v32 }
  0xc2   :  { %v584_v37 = vmax.f32 %v527_v32, %v582_v35 }
  0xc3   :  { %v515_v38 = vpop.f32.mrf.mxu2 }
  0xc4   :  { %v586_v39 = vpack.c.bf16 %v584_v37, %v584_v37  ;;  %v528_v40 = vpop.f32.mrf.mxu3 }
  0xc6   :  { %728 = vmatmul.bf16.vlgmr.msra.gmra.mxu0 %v586_v39 }
  0xd3   :  { %v539_v42 = vpop.f32.mrf.mxu0 }
  0xd4   :  { %v540_v43 = vadd.f32 %v539_v42, %v155_v41  ;;  %v552_v44 = vpop.f32.mrf.mxu1 }
  0xd6   :  { %v553_v45 = vadd.f32 %v552_v44, %v540_v43 }
  0xdb   :  { %v565_v46 = vpop.f32.mrf.mxu2  ;;  %v541_v49 = vpop.f32.mrf.mxu0 }
  0xdc   :  { %v566_v47 = vadd.f32 %v565_v46, %v553_v45  ;;  %v578_v48 = vpop.f32.mrf.mxu3  ;;  %v554_v50 = vpop.f32.mrf.mxu1 }
  0xde   :  { %v579_v51 = vadd.f32 %v578_v48, %v566_v47 }
  0xe0   :  { %v583_v52 = vmul.f32 0.01, %v579_v51 }
  0xe2   :  { %v585_v53 = vmax.f32 %v579_v51, %v583_v52 }
  0xe3   :  { %v567_v55 = vpop.f32.mrf.mxu2 }
  0xe4   :  { %v587_v56 = vpack.c.bf16 %v585_v53, %v585_v53  ;;  %v580_v59 = vpop.f32.mrf.mxu3 }
  0xe6   :  { %741 = vmatmul.bf16.vlgmr.msra.gmra.mxu1 %v587_v56 }
 0x143   :  { %v729_v61 = vpop.f32.mrf.mxu0 }
 0x144   :  { %v730_v0 = vadd.f32 %v1175_v63, %v729_v61 }
 0x14b   :  { %v731_v62 = vpop.f32.mrf.mxu0 }
 0x163   :  { %v742_v1 = vpop.f32.mrf.mxu1 }
 0x164   :  { %v743_v2 = vadd.f32 %v742_v1, %v730_v0 }
 0x166   :  { %746 = vst [vmem:[#allocation10] sm:$0xff] %v743_v2 }
 0x167   :  { %757 = dma.vmem_to_hbm [thread:$0]  %s753_s16, 128, %s755_s19, [#allocation4]  }
 0x16b   :  { %v744_v3 = vpop.f32.mrf.mxu1 }
 0x16c   :  { %1302 = dma.done.wait [#allocation4], 128  }
 0x16d   :  { %1303 = vsyncadd [#allocation4], 4294967168 }
 0x16e   :  { %762 = vsyncpa [#allocation3], 1 }
 0x16f   :  { %763 = vsyncpa [#allocation6], 1 }
 0x170   :  { %764 = vsyncpa [#allocation9], 1 }
 0x171   :  { %765 = vsyncpa [#allocation4], 1 }

</bundles_post_ra>
